<compile_context>
chip_gen: v7x
topology: tpu7x:2x2x1
jax: 0.10.0
libtpu: 0.0.40
codegen_flags: <defaults>
</compile_context>

<pallas_src>
import jax
import jax.numpy as jnp
from jax.experimental import pallas as pl
from jax.experimental.pallas import tpu as pltpu

NEG_SLOPE = 0.01  # F.leaky_relu default negative_slope


def _leaky(v):
    return jnp.where(v > 0, v, jnp.float32(NEG_SLOPE) * v)


def _round_up(x, m):
    return (x + m - 1) // m * m


def _vmem_limit(block_bytes):
    # 2x for double-buffered pipelining + slack, capped at v7x physical VMEM.
    return int(min(64 << 20, max(16 << 20, 2 * block_bytes + (1 << 20))))


# ----------------------------- Pallas kernels -----------------------------

def gcn1_kernel(a_ref, x_ref, w1_ref, b1_ref, w2_ref, xw2_ref):
    # a_ref:  [TILE, N_pad] bf16   normalized adjacency rows for this dst tile
    # x_ref:  [N_pad, F_in] bf16   node features (all source nodes)
    # w1/b1:  GCN layer-1 weight (bf16) / bias (f32); w2: layer-2 weight (bf16)
    # xw2_ref [TILE, F2]    bf16   output: LeakyReLU(GCN1)(tile) @ W2
    # Aggregate-first (F_in < 64 here), then transform: cheaper N^2 term.
    agg = jnp.dot(a_ref[...], x_ref[...],
                  preferred_element_type=jnp.float32)                    # [TILE, F_in]
    h1 = jnp.dot(agg.astype(jnp.bfloat16), w1_ref[...],
                 preferred_element_type=jnp.float32) + b1_ref[...]       # [TILE, F1]
    h1 = _leaky(h1)
    # Fused layer-2 feature transform (transform-first): only h1 @ W2 is needed
    # downstream, so the [N, 64] activation never leaves VMEM.
    xw2_ref[...] = jnp.dot(h1.astype(jnp.bfloat16), w2_ref[...],
                           preferred_element_type=jnp.float32
                           ).astype(xw2_ref.dtype)                       # [TILE, F2]


def gcn2_pool_fc_kernel(a_ref, xw2_ref, b2_ref, pool_ref,
                        wfc1_ref, bfc1_ref, wfc3_ref, bfc3_ref,
                        out_ref, pooled_acc):
    # a_ref:      [TILE, N_pad] bf16
    # xw2_ref:    [N_pad, F2]   bf16  (h1 @ W2 for all source nodes)
    # pool_ref:   [TILE, G_pad] f32   (mean-pool matrix, node-major tile,
    #                                  1/count folded in)
    # out_ref:    [G_pad, C]          written once on the last grid step
    # pooled_acc: [G_pad, F2]   VMEM scratch accumulator
    i = pl.program_id(0)

    @pl.when(i == 0)
    def _():
        pooled_acc[...] = jnp.zeros_like(pooled_acc)

    agg = jnp.dot(a_ref[...], xw2_ref[...],
                  preferred_element_type=jnp.float32)                    # [TILE, F2]
    h2 = _leaky(agg + b2_ref[...])

    # Partial global mean pool for this dst tile: contract the node axis of
    # both operands directly (no explicit in-kernel transpose).
    pooled_acc[...] += jax.lax.dot_general(
        pool_ref[...], h2, (((0,), (0,)), ((), ())),
        preferred_element_type=jnp.float32)                              # [G_pad, F2]

    @pl.when(i == pl.num_programs(0) - 1)
    def _():
        z = jnp.dot(pooled_acc[...], wfc1_ref[...],
                    preferred_element_type=jnp.float32) + bfc1_ref[...]
        z = _leaky(z)
        out_ref[...] = jnp.dot(z, wfc3_ref[...],
                               preferred_element_type=jnp.float32) + bfc3_ref[...]


# ------------------------------ glue (JAX) ---------------------------------

def normalized_adjacency(edge_index, num_nodes, n_pad):
    # PyG GCNConv default: A + I (self loops), symmetric normalization with
    # in-degree (duplicate edges accumulate, matching the scatter-add reference).
    src, dst = edge_index[0], edge_index[1]
    a = jnp.zeros((n_pad, n_pad), jnp.float32)
    a = a.at[dst, src].add(1.0)
    idx = jnp.arange(num_nodes)
    a = a.at[idx, idx].add(1.0)
    deg = jnp.sum(a, axis=1)
    dinv = jnp.where(deg > 0, jax.lax.rsqrt(deg), 0.0)
    return (dinv[:, None] * a) * dinv[None, :]


def mean_pool_matrix(batch, num_graphs, n_pad, g_pad):
    # Node-major [N_pad, G_pad] with 1/count folded in; padded rows are zero.
    n = batch.shape[0]
    counts = jnp.zeros((num_graphs,), jnp.float32).at[batch].add(1.0)
    onehot = (batch[:, None] == jnp.arange(num_graphs)[None, :]).astype(jnp.float32)
    pool = onehot / jnp.maximum(counts, 1.0)[None, :]
    return jnp.zeros((n_pad, g_pad), jnp.float32).at[:n, :num_graphs].set(pool)


def init_params(key, num_features, num_classes):
    def nrm(k, shape, scale=0.1):
        return scale * jax.random.normal(k, shape, dtype=jnp.float32)

    ks = jax.random.split(key, 8)
    return {
        "w1": nrm(ks[0], (num_features, 64)), "b1": nrm(ks[1], (1, 64)),
        "w2": nrm(ks[2], (64, 16)),           "b2": nrm(ks[3], (1, 16)),
        "wfc1": nrm(ks[4], (16, 32)),         "bfc1": nrm(ks[5], (1, 32)),
        "wfc3": nrm(ks[6], (32, num_classes)), "bfc3": nrm(ks[7], (1, num_classes)),
    }


def forward(params, x, edge_index, batch, num_graphs, tile=256):
    n, f_in = x.shape
    f1 = params["w1"].shape[1]
    f2 = params["w2"].shape[1]
    fh = params["wfc1"].shape[1]
    c = params["wfc3"].shape[1]

    tile = max(16, (int(tile) // 16) * 16)     # bf16-friendly sublane multiple
    n_pad = _round_up(n, tile)
    g_pad = _round_up(num_graphs, 8)
    grid = (n_pad // tile,)

    a_hat = normalized_adjacency(edge_index, n, n_pad).astype(jnp.bfloat16)
    x_pad = jnp.zeros((n_pad, f_in), jnp.float32).at[:n].set(x).astype(jnp.bfloat16)
    pool = mean_pool_matrix(batch, num_graphs, n_pad, g_pad)

    # Grid-invariant MXU operands pre-cast once (no per-grid-step casts).
    w1_b = params["w1"].astype(jnp.bfloat16)
    w2_b = params["w2"].astype(jnp.bfloat16)

    # ---- Kernel 1: GCN layer 1 (+ fused layer-2 feature transform) ----
    bytes_a = (tile * n_pad * 2 + tile * f2 * 2
               + (n_pad * f_in + f_in * f1 + f1 * f2) * 2 + f1 * 4)
    xw2 = pl.pallas_call(
        gcn1_kernel,
        out_shape=jax.ShapeDtypeStruct((n_pad, f2), jnp.bfloat16),
        grid=grid,
        in_specs=[
            pl.BlockSpec((tile, n_pad), lambda i: (i, 0)),   # A_hat dst-row tile
            pl.BlockSpec((n_pad, f_in), lambda i: (0, 0)),   # X (all sources)
            pl.BlockSpec((f_in, f1), lambda i: (0, 0)),      # W1
            pl.BlockSpec((1, f1), lambda i: (0, 0)),         # b1
            pl.BlockSpec((f1, f2), lambda i: (0, 0)),        # W2
        ],
        out_specs=pl.BlockSpec((tile, f2), lambda i: (i, 0)),
        compiler_params=pltpu.CompilerParams(
            dimension_semantics=("parallel",),
            vmem_limit_bytes=_vmem_limit(bytes_a)),
    )(a_hat, x_pad, w1_b, params["b1"], w2_b)

    # ---- Kernel 2: GCN layer 2 + mean pool + fc1 + LeakyReLU + fc3 ----
    bytes_b = (tile * n_pad * 2 + tile * g_pad * 4 + n_pad * f2 * 2
               + (f2 + f2 * fh + fh + fh * c + c
                  + g_pad * c + g_pad * f2) * 4)
    out_pad = pl.pallas_call(
        gcn2_pool_fc_kernel,
        out_shape=jax.ShapeDtypeStruct((g_pad, c), jnp.float32),
        grid=grid,
        in_specs=[
            pl.BlockSpec((tile, n_pad), lambda i: (i, 0)),   # A_hat dst-row tile
            pl.BlockSpec((n_pad, f2), lambda i: (0, 0)),     # h1 @ W2 (all sources)
            pl.BlockSpec((1, f2), lambda i: (0, 0)),         # b2
            pl.BlockSpec((tile, g_pad), lambda i: (i, 0)),   # pool node tile
            pl.BlockSpec((f2, fh), lambda i: (0, 0)),        # Wfc1
            pl.BlockSpec((1, fh), lambda i: (0, 0)),         # bfc1
            pl.BlockSpec((fh, c), lambda i: (0, 0)),         # Wfc3
            pl.BlockSpec((1, c), lambda i: (0, 0)),          # bfc3
        ],
        out_specs=pl.BlockSpec((g_pad, c), lambda i: (0, 0)),
        scratch_shapes=[pltpu.VMEM((g_pad, f2), jnp.float32)],
        compiler_params=pltpu.CompilerParams(
            dimension_semantics=("arbitrary",),
            vmem_limit_bytes=_vmem_limit(bytes_b)),
    )(a_hat, xw2, params["b2"], pool,
      params["wfc1"], params["bfc1"], params["wfc3"], params["bfc3"])

    return out_pad[:num_graphs]


# ------------------------- pure-JAX reference check ------------------------

def forward_ref(params, x, edge_index, batch, num_graphs):
    n = x.shape[0]
    a_hat = normalized_adjacency(edge_index, n, n)
    h1 = _leaky(a_hat @ (x @ params["w1"]) + params["b1"])
    h2 = _leaky(a_hat @ (h1 @ params["w2"]) + params["b2"])
    counts = jnp.zeros((num_graphs,), jnp.float32).at[batch].add(1.0)
    pooled = jnp.zeros((num_graphs, h2.shape[1]), jnp.float32).at[batch].add(h2)
    pooled = pooled / jnp.maximum(counts, 1.0)[:, None]
    z = _leaky(pooled @ params["wfc1"] + params["bfc1"])
    return z @ params["wfc3"] + params["bfc3"]


# ---------------------------------- main -----------------------------------

if __name__ == "__main__":
    key = jax.random.PRNGKey(0)
    num_features, num_classes = 8, 3
    nodes_per_graph, num_graphs = 16, 2
    N = nodes_per_graph * num_graphs

    # Deterministic graph: within each graph a directed ring plus skip-2 edges
    # (no self loops — GCNConv adds its own).
    srcs, dsts = [], []
    for g in range(num_graphs):
        off = g * nodes_per_graph
        for i in range(nodes_per_graph):
            srcs += [off + i, off + i]
            dsts += [off + (i + 1) % nodes_per_graph, off + (i + 2) % nodes_per_graph]
    edge_index = jnp.array([srcs, dsts], dtype=jnp.int32)

    kx, kp = jax.random.split(key, 2)
    x = jax.random.normal(kx, (N, num_features), dtype=jnp.float32)
    batch = jnp.repeat(jnp.arange(num_graphs, dtype=jnp.int32), nodes_per_graph)

    params = init_params(kp, num_features, num_classes)

    out = forward(params, x, edge_index, batch, num_graphs, tile=16)  # 2-step grid
    out = jax.block_until_ready(out)

    ref = forward_ref(params, x, edge_index, batch, num_graphs)
    assert out.shape == (num_graphs, num_classes)
    # bf16 MXU operands / bf16 intermediate -> compare against f32 reference
    # with a bf16-appropriate tolerance.
    assert jnp.allclose(out, ref, rtol=2e-2, atol=2e-2), (out, ref)
    print("KERNEL_OK")
</pallas_src>

<mosaic_0001>
module attributes {stable_mosaic.version = 11 : i64} {
  func.func @gcn1_kernel(%arg0: i32, %arg1: memref<16x32xbf16, #tpu.memory_space<vmem>>, %arg2: memref<32x8xbf16, #tpu.memory_space<vmem>>, %arg3: memref<8x64xbf16, #tpu.memory_space<vmem>>, %arg4: memref<1x64xf32, #tpu.memory_space<vmem>>, %arg5: memref<64x16xbf16, #tpu.memory_space<vmem>>, %arg6: memref<16x16xbf16, #tpu.memory_space<vmem>>) attributes {dimension_semantics = [#tpu.dimension_semantics<parallel>], iteration_bounds = array<i64: 2>, scalar_prefetch = 0 : i64, scratch_operands = 0 : i64, tpu.core_type = #tpu.core_type<tc>, window_params = [{transform_indices = @transform_0, window_bounds = array<i64: 16, 32>}, {pipeline_mode = #tpu.pipeline_mode<synchronous>, transform_indices = @transform_1, window_bounds = array<i64: 32, 8>}, {pipeline_mode = #tpu.pipeline_mode<synchronous>, transform_indices = @transform_2, window_bounds = array<i64: 8, 64>}, {pipeline_mode = #tpu.pipeline_mode<synchronous>, transform_indices = @transform_3, window_bounds = array<i64: 1, 64>}, {pipeline_mode = #tpu.pipeline_mode<synchronous>, transform_indices = @transform_4, window_bounds = array<i64: 64, 16>}, {transform_indices = @transform_5, window_bounds = array<i64: 16, 16>}]} {
    %c0 = arith.constant 0 : index
    %c0_0 = arith.constant 0 : index
    %0 = vector.load %arg1[%c0, %c0_0] : memref<16x32xbf16, #tpu.memory_space<vmem>>, vector<16x32xbf16>
    %c0_1 = arith.constant 0 : index
    %c0_2 = arith.constant 0 : index
    %1 = vector.load %arg2[%c0_1, %c0_2] : memref<32x8xbf16, #tpu.memory_space<vmem>>, vector<32x8xbf16>
    %cst = arith.constant dense<0.000000e+00> : vector<16x8xf32>
    %2 = tpu.matmul %0, %1, %cst {dimension_numbers = #tpu.dot_dimension_numbers<[1], [0], [0], [1], [0, 0, 1, 1], [], []>} : vector<16x32xbf16>, vector<32x8xbf16>, vector<16x8xf32> -> vector<16x8xf32>
    %3 = arith.truncf %2 : vector<16x8xf32> to vector<16x8xbf16>
    %c0_3 = arith.constant 0 : index
    %c0_4 = arith.constant 0 : index
    %4 = vector.load %arg3[%c0_3, %c0_4] : memref<8x64xbf16, #tpu.memory_space<vmem>>, vector<8x64xbf16>
    %cst_5 = arith.constant dense<0.000000e+00> : vector<16x64xf32>
    %5 = tpu.matmul %3, %4, %cst_5 {dimension_numbers = #tpu.dot_dimension_numbers<[1], [0], [0], [1], [0, 0, 1, 1], [], []>} : vector<16x8xbf16>, vector<8x64xbf16>, vector<16x64xf32> -> vector<16x64xf32>
    %c0_6 = arith.constant 0 : index
    %c0_7 = arith.constant 0 : index
    %6 = vector.load %arg4[%c0_6, %c0_7] : memref<1x64xf32, #tpu.memory_space<vmem>>, vector<1x64xf32>
    %7 = vector.broadcast %6 : vector<1x64xf32> to vector<16x64xf32>
    %8 = arith.addf %5, %7 : vector<16x64xf32>
    %cst_8 = arith.constant 0.000000e+00 : f32
    %9 = vector.broadcast %cst_8 : f32 to vector<16x64xf32>
    %10 = arith.cmpf ogt, %8, %9 : vector<16x64xf32>
    %cst_9 = arith.constant 0.00999999977 : f32
    %11 = vector.broadcast %cst_9 : f32 to vector<16x64xf32>
    %12 = arith.mulf %11, %8 : vector<16x64xf32>
    %13 = arith.select %10, %8, %12 : vector<16x64xi1>, vector<16x64xf32>
    %14 = arith.truncf %13 : vector<16x64xf32> to vector<16x64xbf16>
    %c0_10 = arith.constant 0 : index
    %c0_11 = arith.constant 0 : index
    %15 = vector.load %arg5[%c0_10, %c0_11] : memref<64x16xbf16, #tpu.memory_space<vmem>>, vector<64x16xbf16>
    %cst_12 = arith.constant dense<0.000000e+00> : vector<16x16xf32>
    %16 = tpu.matmul %14, %15, %cst_12 {dimension_numbers = #tpu.dot_dimension_numbers<[1], [0], [0], [1], [0, 0, 1, 1], [], []>} : vector<16x64xbf16>, vector<64x16xbf16>, vector<16x16xf32> -> vector<16x16xf32>
    %17 = arith.truncf %16 : vector<16x16xf32> to vector<16x16xbf16>
    %c0_13 = arith.constant 0 : index
    %c0_14 = arith.constant 0 : index
    %18 = vector.load %arg6[%c0_13, %c0_14] : memref<16x16xbf16, #tpu.memory_space<vmem>>, vector<16x16xbf16>
    tpu.vector_store %arg6[%c0_13, %c0_14], %17 {strides = array<i32>} : memref<16x16xbf16, #tpu.memory_space<vmem>>, vector<16x16xbf16>,
    return
  }
  func.func @transform_0(%arg0: i32) -> (i32, i32) {
    %c0_i32 = arith.constant 0 : i32
    %c0_i32_0 = arith.constant 0 : i32
    return %arg0, %c0_i32 : i32, i32
  }
  func.func @transform_1(%arg0: i32) -> (i32, i32) {
    %c0_i32 = arith.constant 0 : i32
    %c0_i32_0 = arith.constant 0 : i32
    %c0_i32_1 = arith.constant 0 : i32
    return %c0_i32, %c0_i32_0 : i32, i32
  }
  func.func @transform_2(%arg0: i32) -> (i32, i32) {
    %c0_i32 = arith.constant 0 : i32
    %c0_i32_0 = arith.constant 0 : i32
    %c0_i32_1 = arith.constant 0 : i32
    return %c0_i32, %c0_i32_0 : i32, i32
  }
  func.func @transform_3(%arg0: i32) -> (i32, i32) {
    %c0_i32 = arith.constant 0 : i32
    %c0_i32_0 = arith.constant 0 : i32
    %c0_i32_1 = arith.constant 0 : i32
    return %c0_i32, %c0_i32_0 : i32, i32
  }
  func.func @transform_4(%arg0: i32) -> (i32, i32) {
    %c0_i32 = arith.constant 0 : i32
    %c0_i32_0 = arith.constant 0 : i32
    %c0_i32_1 = arith.constant 0 : i32
    return %c0_i32, %c0_i32_0 : i32, i32
  }
  func.func @transform_5(%arg0: i32) -> (i32, i32) {
    %c0_i32 = arith.constant 0 : i32
    %c0_i32_0 = arith.constant 0 : i32
    return %arg0, %c0_i32 : i32, i32
  }
}

</mosaic_0001>

<bundles_post_ra>
// kernel: tpu_custom_call.1
= control target key start
LH: loop header
LB: loop body
LE: loop exit
PB: predicated region body
PF: predicated region fallthrough
CT: control target
= control target key end

     0   :  { %s625_s18 = smov 0   ;;  %s676_s0 = inlined_call_operand.vmem [shape: bf16[32,32], index: 0, kind: input, shape index: {}]   ;;  %s677_s1 = inlined_call_operand.vmem [shape: bf16[32,8], index: 1, kind: input, shape index: {}]   ;;  %s678_s2 = inlined_call_operand.vmem [shape: bf16[8,64], index: 2, kind: input, shape index: {}]   ;;  %s679_s3 = inlined_call_operand.vmem [shape: f32[1,64], index: 3, kind: input, shape index: {}]   ;;  %s680_s4 = inlined_call_operand.vmem [shape: bf16[64,16], index: 4, kind: input, shape index: {}]   ;;  %s681_s5 = inlined_call_operand.vmem [shape: bf16[32,16], index: 5, kind: output, shape index: {}]  }
   0x1 LB: > { %s506_s19 = sadd.s32 4294967295, %s591_s18   ;;  %p510_p0 = scmp.ge.s32.totalorder %s591_s18, 1  ;;  %s591_s18 = sphi %s625_s18, %s15_s18  }
   0x2   : > { %p188_p1 = scmp.lt.s32.totalorder %s591_s18, 3 }
   0x4   : > { %p189_p2 = pnand %p510_p0, %p188_p1 }
   0x5   : > { %v578_v0 = vld [vmem:[%s677_s1] sm:$0xff] (!%p189_p2)   ;;  %v593_v1 = vmov (!%p189_p2), 0.0   ;;  %v579_v2 = vld [vmem:[%s677_s1 + $0x8] sm:$0xff] (!%p189_p2)   ;;  %vm594_vm0 = vmmov (!%p189_p2), 0   ;;  %s511_s24 = sshll.u32 (!%p189_p2), %s506_s19, 1  ;;  %vm310_vm1 = vcmask (!%p189_p2), 1043456  }
   0x6   : > { %192 = sbr.rel (%p189_p2) target bundleno = 671 (0x29f), region = 40  ;;  %542 = vmatprep.subr.bf16.mxu0 (!%p189_p2), %v593_v1  ;;  %556 = vmatprep.subr.bf16.mxu1 (!%p189_p2), %v593_v1  ;;  %p217_p3 = scmp.lt.s32.totalorder (!%p189_p2), %s511_s24, 3  ;;  %v298_v3 = vld [vmem:[%s678_s2] sm:$0xf] (!%p189_p2)  ;;  %vm252_vm2 = vcmask (!%p189_p2), 261120   ;;  %v582_v7 = vld [vmem:[%s680_s4 + $0x8] sm:$0xff] (!%p189_p2)  }
   0x7   : > { %543 = vmatpush3.bf16.msra.mxu0 (!%p189_p2), %v578_v0  ;;  %546 = vmatprep.mubr.msk.bf16.mxu0 (!%p189_p2), %vm594_vm0, %v593_v1  ;;  %v312_v5 = vsel (!%p189_p2), %vm310_vm1, %v298_v3, 0  ;;  %v581_v6 = vld [vmem:[%s680_s4] sm:$0xff] (!%p189_p2)   ;;  %vm306_vm3 = vcmask (!%p189_p2), 64512   ;;  %v583_v13 = vld [vmem:[%s680_s4 + $0x10] sm:$0xff] (!%p189_p2)   ;;  %v584_v14 = vld [vmem:[%s680_s4 + $0x18] sm:$0xff] (!%p189_p2)   ;;  %vm394_vm6 = vcmask (!%p189_p2), 523264  }
   0x8   : > { %544 = vmatprep.subr.bf16.mxu0 (!%p189_p2), %v593_v1  ;;  %564 = vmatprep.mubr.msk.bf16.mxu1 (!%p189_p2), %vm594_vm0, %v593_v1  ;;  %v519_v15 = vld [vmem:[%s679_s3] ss:$0 sm:$0xff] (!%p189_p2)  ;;  %vm447_vm7 = vcmask (!%p189_p2), 125952  }
   0x9   : > { %557 = vmatpush3.bf16.msra.mxu1 (!%p189_p2), %v581_v6 }
   0xa   : > { %558 = vmatprep.subr.bf16.mxu1 (!%p189_p2), %v593_v1 }
   0xb   : > { %545 = vmatpush3.bf16.msra.mxu0 (!%p189_p2), %v579_v2 }
   0xc   : > { %550 = vmatprep.subr.bf16.mxu0 (!%p189_p2), %v593_v1 }
   0xd   : > { %s683_s24 = smov (!%p217_p3, %s511_s24), 3  ;;  %559 = vmatpush3.bf16.msra.mxu1 %v582_v7 }
   0xe   : > { %s512_s27 = sshll.u32 %s683_s24, 2  ;;  %560 = vmatprep.subr.bf16.mxu1 %v593_v1 }
   0xf   : > { %s220_s30 = scalar_lea.vmem %s676_s0, %s512_s27  ;;  %s226_s19 = scalar_lea.vmem %s681_s5, %s512_s27 }
  0x10   : > { %v580_v4 = vld [vmem:[%s220_s30] sm:$0xff]  }
  0x11   : > { %547 = vmatmul.mubr.msk.bf16.vlgmr.msra.gmra.mrb[0].mxu0 %vm252_vm2, %v580_v4  ;;  %561 = vmatpush3.bf16.msra.mxu1 %v583_v13 }
  0x12   : > { %551 = vmatpush3.bf16.msra.mxu0 %v312_v5  ;;  %552 = vmatprep.mubr.msk.bf16.mxu0 %vm594_vm0, %v593_v1 }
  0x13   : > { %562 = vmatprep.subr.bf16.mxu1 %v593_v1 }
  0x15   : > { %563 = vmatpush3.bf16.msra.mxu1 %v584_v14 }
  0xe4   : > { %v290_v8 = vpop.f32.mrb[0].mxu0 }
  0xe5   : > { %v548_v9 = vpop.f32.mrb[1].mxu0 }
  0xe6   : > { %v293_v10 = vpop.f32.mrb[2].mxu0 }
  0xe7   : > { %v297_v11 = vpack.c.bf16 %v293_v10, %v290_v8  ;;  %v549_v12 = vpop.f32.mrb[3].mxu0 }
  0xe9   : > { %553 = vmatmul.mubr.msk.bf16.vlgmr.msra.gmra.mrb[4].mxu0 %vm306_vm3, %v297_v11 }
 0x1bc   : > { %v348_v16 = vpop.f32.mrb[4].mxu0 }
 0x1bd   : > { %v349_v17 = vadd.f32 %v519_v15, %v348_v16  ;;  %v554_v18 = vpop.f32.mrb[5].mxu0 }
 0x1be   : > { %v351_v19 = vpop.f32.mrb[6].mxu0 }
 0x1bf   : > { %v357_v20 = vmul.f32 0.01, %v349_v17  ;;  %v352_v21 = vadd.f32 %v519_v15, %v351_v19  ;;  %v555_v22 = vpop.f32.mrb[7].mxu0  ;;  %vm355_vm4 = vcmp.gt.f32.partialorder %v349_v17, 0.0 }
 0x1c1   : > { %vm356_vm5 = vcmp.gt.f32.partialorder %v352_v21, 0.0  ;;  %v358_v23 = vmul.f32 0.01, %v352_v21  ;;  %v359_v24 = vsel %vm355_vm4, %v349_v17, %v357_v20 }
 0x1c3   : > { %v360_v25 = vsel %vm356_vm5, %v352_v21, %v358_v23 }
 0x1c4   : > { %v361_v26 = vpack.c.bf16 %v360_v25, %v359_v24 }
 0x1c6   : > { %565 = vmatmul.mubr.msk.bf16.vlgmr.msra.gmra.mrb[0].mxu1 %vm394_vm6, %v361_v26 }
 0x299   : > { %v432_v27 = vpop.f32.mrb[0].mxu1 }
 0x29a   : > { %v530_v28 = vpack.c.bf16 %v432_v27, %v432_v27  ;;  %v566_v29 = vpop.f32.mrb[1].mxu1 }
 0x29b   : > { %v435_v30 = vpop.f32.mrb[2].mxu1 }
 0x29c   : > { %448 = vst.msk [vmem:[%s226_s19] sm:$0xf] %vm447_vm7, %v530_v28  ;;  %v531_v31 = vpack.c.bf16 %v435_v30, %v435_v30  ;;  %v567_v32 = vpop.f32.mrb[3].mxu1 }
 0x29e   : > { %449 = vst.msk [vmem:[%s226_s19 + $0x4] sm:$0xf] %vm447_vm7, %v531_v31 }
 0x29f PF: > { %s15_s18 = sadd.s32 1, %s591_s18  }
 0x2a0   : > { %p12_p4 = scmp.ge.s32.totalorder %s15_s18, 4  }
 0x2a2   :  { %14 = sbr.rel (!%p12_p4) target bundleno = 1 (0x1), region = 70 }

</bundles_post_ra>
